<compile_context>
chip_gen: v6e
topology: v6e:2x2x1
jax: 0.10.0
libtpu: 0.0.40
codegen_flags: <defaults>
</compile_context>

<pallas_src>
import functools
import math

import jax
import jax.numpy as jnp
from jax.experimental import pallas as pl
from jax.experimental.pallas import tpu as pltpu


def _gelu_exact(x):
    # PyTorch F.gelu default is the exact erf formulation.
    return 0.5 * x * (1.0 + jax.lax.erf(x * (1.0 / math.sqrt(2.0))))


def _round_up(x, m):
    return ((x + m - 1) // m) * m


def _pad_to(arr, shape):
    pads = [(0, s - d) for s, d in zip(shape, arr.shape)]
    if all(p == (0, 0) for p in pads):
        return arr
    return jnp.pad(arr, pads)


# ----------------------------------------------------------------------------
# Fused MoE mixing kernel over a tile of tokens.
#
#   xp        = x @ W_u                                  (TN, Dhp)  [MXU bf16]
#   all_dots  = xp @ h_all_T                             (TN, Ep)   [MXU bf16]
#   for k:  sel_k  = onehot(idx[:, k])                   (TN, Ep)
#           dot_k  = sum_e all_dots * sel_k              (TN, 1)
#           act_k  = gelu(dot_k) * scores[:, k]          (TN, 1)
#           comb  += act_k * sel_k                       (TN, Ep)
#   wh        = comb @ h_all                             (TN, Dhp)  [MXU bf16]
#   out       = (wh @ W_v) / num_heads                   (TN, D)    [MXU bf16]
#
# W_u, W_v, h_all, h_all_T use constant index_maps -> resident in VMEM; only
# the per-token x / pack / out tiles stream from HBM.
# ----------------------------------------------------------------------------
def _moe_mix_kernel(x_ref, pack_ref, wu_ref, wv_ref, hall_ref, hallT_ref,
                    o_ref, *, num_heads, hk):
    x = x_ref[...]                                    # (TN, D)    bf16
    pk = pack_ref[...]                                # (TN, 2*hk) f32
    idx_f = pk[:, :hk]                                # integer-valued f32
    scr = pk[:, hk:]                                  # f32

    # x @ W_u, f32 accumulation.
    xp = jnp.dot(x, wu_ref[...], preferred_element_type=jnp.float32)     # (TN, Dhp)
    # xp @ h_all^T without an in-kernel transpose (h_all_T is resident).
    all_dots = jnp.dot(xp.astype(jnp.bfloat16), hallT_ref[...],
                       preferred_element_type=jnp.float32)               # (TN, Ep)

    tn, ep = all_dots.shape
    # Hoisted out of the hk loop (JAX does not CSE broadcast_in_dim).
    eidx = jax.lax.broadcasted_iota(jnp.int32, (tn, ep), 1).astype(jnp.float32)

    comb = jnp.zeros((tn, ep), jnp.float32)
    for k in range(hk):                               # hk = num_heads * top_k (small)
        sel = (idx_f[:, k:k + 1] == eidx).astype(jnp.float32)             # (TN, Ep)
        dot_k = jnp.sum(all_dots * sel, axis=-1, keepdims=True)           # (TN, 1)
        act_k = _gelu_exact(dot_k) * scr[:, k:k + 1]                      # (TN, 1)
        comb = comb + act_k * sel

    wh = jnp.dot(comb.astype(jnp.bfloat16), hall_ref[...],
                 preferred_element_type=jnp.float32)                      # (TN, Dhp)
    out = jnp.dot(wh.astype(jnp.bfloat16), wv_ref[...],
                  preferred_element_type=jnp.float32)                     # (TN, D)
    o_ref[...] = (out * (1.0 / num_heads)).astype(o_ref.dtype)


def moe_mix(x, pack, w_u, w_v, h_all, h_all_t, *, num_heads, hk, tile_n,
            out_dtype):
    n_pad, d = x.shape
    dh_pad = w_u.shape[1]
    e_pad = h_all.shape[0]
    hk2 = pack.shape[1]
    grid = (n_pad // tile_n,)
    kernel = functools.partial(_moe_mix_kernel, num_heads=num_heads, hk=hk)
    return pl.pallas_call(
        kernel,
        out_shape=jax.ShapeDtypeStruct((n_pad, d), out_dtype),
        grid=grid,
        in_specs=[
            pl.BlockSpec((tile_n, d), lambda i: (i, 0)),        # x tile (bf16)
            pl.BlockSpec((tile_n, hk2), lambda i: (i, 0)),      # [idx|scores] tile
            pl.BlockSpec((d, dh_pad), lambda i: (0, 0)),        # W_u (resident)
            pl.BlockSpec((dh_pad, d), lambda i: (0, 0)),        # W_v (resident)
            pl.BlockSpec((e_pad, dh_pad), lambda i: (0, 0)),    # h_all (resident)
            pl.BlockSpec((dh_pad, e_pad), lambda i: (0, 0)),    # h_all^T (resident)
        ],
        out_specs=pl.BlockSpec((tile_n, d), lambda i: (i, 0)),
        compiler_params=pltpu.CompilerParams(
            dimension_semantics=("parallel",),
            vmem_limit_bytes=16 * 1024 * 1024,
        ),
    )(x, pack, w_u, w_v, h_all, h_all_t)


# ----------------------------------------------------------------------------
# Product-key router (plain JAX glue).
# TODO(synk): torch.topk / gather based routing has no clean Pallas equivalent;
#             kept in JAX (jax.lax.top_k / take_along_axis).
# ----------------------------------------------------------------------------
def product_key_router(x_flat, params, *, num_heads, top_k, num_sub_keys):
    n = x_flat.shape[0]
    k_cand = top_k * 2
    all_scores, all_indices = [], []
    for h in range(num_heads):
        wq = params["query_proj_w"][h]     # (d_query, d_model)
        bq = params["query_proj_b"][h]     # (d_query,)
        q = x_flat @ wq.T + bq
        # BatchNorm1d at init (weight=1, bias=0), training mode -> batch stats.
        mean = jnp.mean(q, axis=0, keepdims=True)
        var = jnp.var(q, axis=0, keepdims=True)
        q = (q - mean) / jnp.sqrt(var + 1e-5)

        half = q.shape[1] // 2
        q1, q2 = q[:, :half], q[:, half:]
        s1 = q1 @ params["sub_keys_1"].T        # (N, num_sub_keys)
        s2 = q2 @ params["sub_keys_2"].T        # (N, num_sub_keys)

        ts1, ti1 = jax.lax.top_k(s1, k_cand)
        ts2, ti2 = jax.lax.top_k(s2, k_cand)
        comb = (ts1[:, :, None] + ts2[:, None, :]).reshape(n, -1)
        fs, ci = jax.lax.top_k(comb, top_k)
        fs = jax.nn.softmax(fs.astype(jnp.float32), axis=-1).astype(x_flat.dtype)

        i1 = ci // k_cand
        i2 = ci % k_cand
        fi1 = jnp.take_along_axis(ti1, i1, axis=1)
        fi2 = jnp.take_along_axis(ti2, i2, axis=1)
        all_scores.append(fs)
        all_indices.append(fi1 * num_sub_keys + fi2)
    return jnp.stack(all_scores, axis=1), jnp.stack(all_indices, axis=1)


# ----------------------------------------------------------------------------
# Full forward.
# ----------------------------------------------------------------------------
def simplified_hypernet_moe_forward(x, params, cfg, *, tile_n=512):
    b, s, d = x.shape
    x_flat = x.reshape(-1, d)
    n = x_flat.shape[0]

    scores, expert_indices = product_key_router(
        x_flat, params,
        num_heads=cfg["num_routing_heads"], top_k=cfg["top_k"],
        num_sub_keys=int(math.sqrt(cfg["num_experts"])),
    )

    w1 = params["gen_w1"].T.astype(jnp.float32)       # (d_latent, d_hidden)
    w2 = params["gen_w2"].T.astype(jnp.float32)       # (d_hidden, 2*d_model)
    w_u = w2[:, :d].T                                 # (d_model, d_hidden)
    w_v = w2[:, d:]                                   # (d_hidden, d_model)

    # Per-expert hidden vectors: tiny matmul, computed in plain jnp (f32) and
    # kept resident in VMEM by the mixing kernel (no separate Pallas launch).
    h_all = _gelu_exact(params["expert_latents"].astype(jnp.float32) @ w1)   # (E, Dh)

    hk = cfg["num_routing_heads"] * cfg["top_k"]
    # Pack [indices | scores] into a single f32 stream.  Indices are exactly
    # representable in f32 for any realistic num_experts (< 2^24).
    flat_idx = expert_indices.reshape(n, hk).astype(jnp.float32)
    flat_scr = scores.reshape(n, hk).astype(jnp.float32)
    pack = jnp.concatenate([flat_idx, flat_scr], axis=1)       # (N, 2*hk)

    # Lane-dense padding of the resident weight dims only (zero padding is
    # exact: padded rows/cols contribute exact zeros to every contraction).
    dh = w_u.shape[1]
    dh_pad = _round_up(dh, 128)
    e = h_all.shape[0]
    e_pad = _round_up(e, 128)

    # Token tile: multiple of 16 (bf16 sublane packing).  No forced 2-tile
    # split: on v5e/v6e the grid is a serial loop; v7x splits via "parallel"
    # only when there are >= 2 tiles worth of tokens anyway.
    eff_tile = max(16, min(tile_n, _round_up(n, 16)))
    n_pad = _round_up(n, eff_tile)

    x_p = _pad_to(x_flat, (n_pad, d)).astype(jnp.bfloat16)
    pack_p = _pad_to(pack, (n_pad, 2 * hk))
    wu_p = _pad_to(w_u, (d, dh_pad)).astype(jnp.bfloat16)
    wv_p = _pad_to(w_v, (dh_pad, d)).astype(jnp.bfloat16)
    hall_p = _pad_to(h_all, (e_pad, dh_pad)).astype(jnp.bfloat16)
    hallT_p = hall_p.T                                          # (Dhp, Ep)

    out_p = moe_mix(x_p, pack_p, wu_p, wv_p, hall_p, hallT_p,
                    num_heads=cfg["num_routing_heads"], hk=hk,
                    tile_n=eff_tile, out_dtype=x.dtype)
    return out_p[:n, :].reshape(b, s, d)


# Pure-JAX f32 reference of the (vectorized) torch loop for verification.
def reference_forward(x, params, cfg):
    b, s, d = x.shape
    x_flat = x.reshape(-1, d)
    n = x_flat.shape[0]
    scores, expert_indices = product_key_router(
        x_flat, params,
        num_heads=cfg["num_routing_heads"], top_k=cfg["top_k"],
        num_sub_keys=int(math.sqrt(cfg["num_experts"])),
    )
    w1 = params["gen_w1"].T
    w2 = params["gen_w2"].T
    w_u = w2[:, :d].T
    w_v = w2[:, d:]
    h_all = _gelu_exact(params["expert_latents"] @ w1)
    hk = cfg["num_routing_heads"] * cfg["top_k"]
    h_sel = h_all[expert_indices.reshape(n, hk)]
    scr = scores.reshape(n, hk)
    xp = x_flat @ w_u
    dots = jnp.einsum("nkh,nh->nk", h_sel, xp)
    act = _gelu_exact(dots) * scr
    out = jnp.einsum("nk,nkh->nh", act, h_sel) @ w_v
    out = out / cfg["num_routing_heads"]
    return out.reshape(b, s, d)


if __name__ == "__main__":
    cfg = dict(
        d_model=32,
        num_experts=16,            # num_sub_keys = 4
        top_k=2,
        d_query=16,
        num_routing_heads=2,
        d_latent=8,
        d_intermediate_hypernet=32,
    )
    B, S = 2, 8
    D = cfg["d_model"]
    num_sub_keys = int(math.sqrt(cfg["num_experts"]))

    key = jax.random.PRNGKey(0)
    kx, k0, k1, k2, k3, k4, k5, k6 = jax.random.split(key, 8)

    x = jax.random.normal(kx, (B, S, D), jnp.float32)

    params = {
        "expert_latents": jax.random.normal(k0, (cfg["num_experts"], cfg["d_latent"]), jnp.float32),
        "gen_w1": 0.1 * jax.random.normal(k1, (cfg["d_intermediate_hypernet"], cfg["d_latent"]), jnp.float32),
        "gen_w2": 0.1 * jax.random.normal(k2, (2 * D, cfg["d_intermediate_hypernet"]), jnp.float32),
        "query_proj_w": 0.1 * jax.random.normal(k3, (cfg["num_routing_heads"], cfg["d_query"], D), jnp.float32),
        "query_proj_b": 0.1 * jax.random.normal(k4, (cfg["num_routing_heads"], cfg["d_query"]), jnp.float32),
        "sub_keys_1": jax.random.normal(k5, (num_sub_keys, cfg["d_query"] // 2), jnp.float32),
        "sub_keys_2": jax.random.normal(k6, (num_sub_keys, cfg["d_query"] // 2), jnp.float32),
    }

    out = simplified_hypernet_moe_forward(x, params, cfg)
    out = jax.block_until_ready(out)
    ref = reference_forward(x, params, cfg)

    assert out.shape == (B, S, D)
    assert bool(jnp.all(jnp.isfinite(out)))
    # bf16 MXU operands with f32 accumulation vs. the all-f32 XLA reference.
    assert bool(jnp.allclose(out, ref, rtol=2e-2, atol=2e-2)), "mismatch vs reference"
    print("KERNEL_OK")
</pallas_src>

<mosaic_0001>
module attributes {stable_mosaic.version = 11 : i64} {
  func.func @_moe_mix_kernel(%arg0: i32, %arg1: memref<16x32xbf16, #tpu.memory_space<vmem>>, %arg2: memref<16x8xf32, #tpu.memory_space<vmem>>, %arg3: memref<32x128xbf16, #tpu.memory_space<vmem>>, %arg4: memref<128x32xbf16, #tpu.memory_space<vmem>>, %arg5: memref<128x128xbf16, #tpu.memory_space<vmem>>, %arg6: memref<128x128xbf16, #tpu.memory_space<vmem>>, %arg7: memref<16x32xf32, #tpu.memory_space<vmem>>) attributes {dimension_semantics = [#tpu.dimension_semantics<parallel>], iteration_bounds = array<i64: 1>, scalar_prefetch = 0 : i64, scratch_operands = 0 : i64, tpu.core_type = #tpu.core_type<tc>, window_params = [{transform_indices = @transform_0, window_bounds = array<i64: 16, 32>}, {transform_indices = @transform_1, window_bounds = array<i64: 16, 8>}, {pipeline_mode = #tpu.pipeline_mode<synchronous>, transform_indices = @transform_2, window_bounds = array<i64: 32, 128>}, {pipeline_mode = #tpu.pipeline_mode<synchronous>, transform_indices = @transform_3, window_bounds = array<i64: 128, 32>}, {pipeline_mode = #tpu.pipeline_mode<synchronous>, transform_indices = @transform_4, window_bounds = array<i64: 128, 128>}, {pipeline_mode = #tpu.pipeline_mode<synchronous>, transform_indices = @transform_5, window_bounds = array<i64: 128, 128>}, {transform_indices = @transform_6, window_bounds = array<i64: 16, 32>}]} {
    %c0 = arith.constant 0 : index
    %c0_0 = arith.constant 0 : index
    %0 = vector.load %arg1[%c0, %c0_0] : memref<16x32xbf16, #tpu.memory_space<vmem>>, vector<16x32xbf16>
    %c0_1 = arith.constant 0 : index
    %c0_2 = arith.constant 0 : index
    %1 = vector.load %arg2[%c0_1, %c0_2] : memref<16x8xf32, #tpu.memory_space<vmem>>, vector<16x8xf32>
    %2 = vector.extract_strided_slice %1 {offsets = [0, 0], sizes = [16, 4], strides = [1, 1]} : vector<16x8xf32> to vector<16x4xf32>
    %3 = vector.extract_strided_slice %1 {offsets = [0, 4], sizes = [16, 4], strides = [1, 1]} : vector<16x8xf32> to vector<16x4xf32>
    %c0_3 = arith.constant 0 : index
    %c0_4 = arith.constant 0 : index
    %4 = vector.load %arg3[%c0_3, %c0_4] : memref<32x128xbf16, #tpu.memory_space<vmem>>, vector<32x128xbf16>
    %cst = arith.constant dense<0.000000e+00> : vector<16x128xf32>
    %5 = tpu.matmul %0, %4, %cst {dimension_numbers = #tpu.dot_dimension_numbers<[1], [0], [0], [1], [0, 0, 1, 1], [], []>} : vector<16x32xbf16>, vector<32x128xbf16>, vector<16x128xf32> -> vector<16x128xf32>
    %6 = arith.truncf %5 : vector<16x128xf32> to vector<16x128xbf16>
    %c0_5 = arith.constant 0 : index
    %c0_6 = arith.constant 0 : index
    %7 = vector.load %arg6[%c0_5, %c0_6] : memref<128x128xbf16, #tpu.memory_space<vmem>>, vector<128x128xbf16>
    %cst_7 = arith.constant dense<0.000000e+00> : vector<16x128xf32>
    %8 = tpu.matmul %6, %7, %cst_7 {dimension_numbers = #tpu.dot_dimension_numbers<[1], [0], [0], [1], [0, 0, 1, 1], [], []>} : vector<16x128xbf16>, vector<128x128xbf16>, vector<16x128xf32> -> vector<16x128xf32>
    %9 = tpu.iota {dimensions = array<i32: 1>} : vector<16x128xi32>
    %10 = arith.sitofp %9 : vector<16x128xi32> to vector<16x128xf32>
    %cst_8 = arith.constant 0.000000e+00 : f32
    %11 = vector.broadcast %cst_8 : f32 to vector<16x128xf32>
    %12 = vector.extract_strided_slice %2 {offsets = [0, 0], sizes = [16, 1], strides = [1, 1]} : vector<16x4xf32> to vector<16x1xf32>
    %13 = vector.broadcast %12 : vector<16x1xf32> to vector<16x128xf32>
    %14 = arith.cmpf oeq, %13, %10 : vector<16x128xf32>
    %15 = arith.extui %14 : vector<16x128xi1> to vector<16x128xi32>
    %16 = arith.sitofp %15 : vector<16x128xi32> to vector<16x128xf32>
    %17 = arith.mulf %8, %16 : vector<16x128xf32>
    %cst_9 = arith.constant dense<0.000000e+00> : vector<16xf32>
    %18 = vector.multi_reduction <add>, %17, %cst_9 [1] : vector<16x128xf32> to vector<16xf32>
    %19 = vector.shape_cast %18 : vector<16xf32> to vector<16x1xf32>
    %cst_10 = arith.constant 5.000000e-01 : f32
    %20 = vector.broadcast %cst_10 : f32 to vector<16x1xf32>
    %21 = arith.mulf %20, %19 : vector<16x1xf32>
    %cst_11 = arith.constant 0.707106769 : f32
    %22 = vector.broadcast %cst_11 : f32 to vector<16x1xf32>
    %23 = arith.mulf %19, %22 : vector<16x1xf32>
    %24 = math.erf %23 : vector<16x1xf32>
    %cst_12 = arith.constant 1.000000e+00 : f32
    %25 = vector.broadcast %cst_12 : f32 to vector<16x1xf32>
    %26 = arith.addf %25, %24 : vector<16x1xf32>
    %27 = arith.mulf %21, %26 : vector<16x1xf32>
    %28 = vector.extract_strided_slice %3 {offsets = [0, 0], sizes = [16, 1], strides = [1, 1]} : vector<16x4xf32> to vector<16x1xf32>
    %29 = arith.mulf %27, %28 : vector<16x1xf32>
    %30 = vector.broadcast %29 : vector<16x1xf32> to vector<16x128xf32>
    %31 = arith.mulf %30, %16 : vector<16x128xf32>
    %32 = arith.addf %11, %31 : vector<16x128xf32>
    %33 = vector.extract_strided_slice %2 {offsets = [0, 1], sizes = [16, 1], strides = [1, 1]} : vector<16x4xf32> to vector<16x1xf32>
    %34 = vector.broadcast %33 : vector<16x1xf32> to vector<16x128xf32>
    %35 = arith.cmpf oeq, %34, %10 : vector<16x128xf32>
    %36 = arith.extui %35 : vector<16x128xi1> to vector<16x128xi32>
    %37 = arith.sitofp %36 : vector<16x128xi32> to vector<16x128xf32>
    %38 = arith.mulf %8, %37 : vector<16x128xf32>
    %cst_13 = arith.constant dense<0.000000e+00> : vector<16xf32>
    %39 = vector.multi_reduction <add>, %38, %cst_13 [1] : vector<16x128xf32> to vector<16xf32>
    %40 = vector.shape_cast %39 : vector<16xf32> to vector<16x1xf32>
    %cst_14 = arith.constant 5.000000e-01 : f32
    %41 = vector.broadcast %cst_14 : f32 to vector<16x1xf32>
    %42 = arith.mulf %41, %40 : vector<16x1xf32>
    %cst_15 = arith.constant 0.707106769 : f32
    %43 = vector.broadcast %cst_15 : f32 to vector<16x1xf32>
    %44 = arith.mulf %40, %43 : vector<16x1xf32>
    %45 = math.erf %44 : vector<16x1xf32>
    %cst_16 = arith.constant 1.000000e+00 : f32
    %46 = vector.broadcast %cst_16 : f32 to vector<16x1xf32>
    %47 = arith.addf %46, %45 : vector<16x1xf32>
    %48 = arith.mulf %42, %47 : vector<16x1xf32>
    %49 = vector.extract_strided_slice %3 {offsets = [0, 1], sizes = [16, 1], strides = [1, 1]} : vector<16x4xf32> to vector<16x1xf32>
    %50 = arith.mulf %48, %49 : vector<16x1xf32>
    %51 = vector.broadcast %50 : vector<16x1xf32> to vector<16x128xf32>
    %52 = arith.mulf %51, %37 : vector<16x128xf32>
    %53 = arith.addf %32, %52 : vector<16x128xf32>
    %54 = vector.extract_strided_slice %2 {offsets = [0, 2], sizes = [16, 1], strides = [1, 1]} : vector<16x4xf32> to vector<16x1xf32>
    %55 = vector.broadcast %54 : vector<16x1xf32> to vector<16x128xf32>
    %56 = arith.cmpf oeq, %55, %10 : vector<16x128xf32>
    %57 = arith.extui %56 : vector<16x128xi1> to vector<16x128xi32>
    %58 = arith.sitofp %57 : vector<16x128xi32> to vector<16x128xf32>
    %59 = arith.mulf %8, %58 : vector<16x128xf32>
    %cst_17 = arith.constant dense<0.000000e+00> : vector<16xf32>
    %60 = vector.multi_reduction <add>, %59, %cst_17 [1] : vector<16x128xf32> to vector<16xf32>
    %61 = vector.shape_cast %60 : vector<16xf32> to vector<16x1xf32>
    %cst_18 = arith.constant 5.000000e-01 : f32
    %62 = vector.broadcast %cst_18 : f32 to vector<16x1xf32>
    %63 = arith.mulf %62, %61 : vector<16x1xf32>
    %cst_19 = arith.constant 0.707106769 : f32
    %64 = vector.broadcast %cst_19 : f32 to vector<16x1xf32>
    %65 = arith.mulf %61, %64 : vector<16x1xf32>
    %66 = math.erf %65 : vector<16x1xf32>
    %cst_20 = arith.constant 1.000000e+00 : f32
    %67 = vector.broadcast %cst_20 : f32 to vector<16x1xf32>
    %68 = arith.addf %67, %66 : vector<16x1xf32>
    %69 = arith.mulf %63, %68 : vector<16x1xf32>
    %70 = vector.extract_strided_slice %3 {offsets = [0, 2], sizes = [16, 1], strides = [1, 1]} : vector<16x4xf32> to vector<16x1xf32>
    %71 = arith.mulf %69, %70 : vector<16x1xf32>
    %72 = vector.broadcast %71 : vector<16x1xf32> to vector<16x128xf32>
    %73 = arith.mulf %72, %58 : vector<16x128xf32>
    %74 = arith.addf %53, %73 : vector<16x128xf32>
    %75 = vector.extract_strided_slice %2 {offsets = [0, 3], sizes = [16, 1], strides = [1, 1]} : vector<16x4xf32> to vector<16x1xf32>
    %76 = vector.broadcast %75 : vector<16x1xf32> to vector<16x128xf32>
    %77 = arith.cmpf oeq, %76, %10 : vector<16x128xf32>
    %78 = arith.extui %77 : vector<16x128xi1> to vector<16x128xi32>
    %79 = arith.sitofp %78 : vector<16x128xi32> to vector<16x128xf32>
    %80 = arith.mulf %8, %79 : vector<16x128xf32>
    %cst_21 = arith.constant dense<0.000000e+00> : vector<16xf32>
    %81 = vector.multi_reduction <add>, %80, %cst_21 [1] : vector<16x128xf32> to vector<16xf32>
    %82 = vector.shape_cast %81 : vector<16xf32> to vector<16x1xf32>
    %cst_22 = arith.constant 5.000000e-01 : f32
    %83 = vector.broadcast %cst_22 : f32 to vector<16x1xf32>
    %84 = arith.mulf %83, %82 : vector<16x1xf32>
    %cst_23 = arith.constant 0.707106769 : f32
    %85 = vector.broadcast %cst_23 : f32 to vector<16x1xf32>
    %86 = arith.mulf %82, %85 : vector<16x1xf32>
    %87 = math.erf %86 : vector<16x1xf32>
    %cst_24 = arith.constant 1.000000e+00 : f32
    %88 = vector.broadcast %cst_24 : f32 to vector<16x1xf32>
    %89 = arith.addf %88, %87 : vector<16x1xf32>
    %90 = arith.mulf %84, %89 : vector<16x1xf32>
    %91 = vector.extract_strided_slice %3 {offsets = [0, 3], sizes = [16, 1], strides = [1, 1]} : vector<16x4xf32> to vector<16x1xf32>
    %92 = arith.mulf %90, %91 : vector<16x1xf32>
    %93 = vector.broadcast %92 : vector<16x1xf32> to vector<16x128xf32>
    %94 = arith.mulf %93, %79 : vector<16x128xf32>
    %95 = arith.addf %74, %94 : vector<16x128xf32>
    %96 = arith.truncf %95 : vector<16x128xf32> to vector<16x128xbf16>
    %c0_25 = arith.constant 0 : index
    %c0_26 = arith.constant 0 : index
    %97 = vector.load %arg5[%c0_25, %c0_26] : memref<128x128xbf16, #tpu.memory_space<vmem>>, vector<128x128xbf16>
    %cst_27 = arith.constant dense<0.000000e+00> : vector<16x128xf32>
    %98 = tpu.matmul %96, %97, %cst_27 {dimension_numbers = #tpu.dot_dimension_numbers<[1], [0], [0], [1], [0, 0, 1, 1], [], []>} : vector<16x128xbf16>, vector<128x128xbf16>, vector<16x128xf32> -> vector<16x128xf32>
    %99 = arith.truncf %98 : vector<16x128xf32> to vector<16x128xbf16>
    %c0_28 = arith.constant 0 : index
    %c0_29 = arith.constant 0 : index
    %100 = vector.load %arg4[%c0_28, %c0_29] : memref<128x32xbf16, #tpu.memory_space<vmem>>, vector<128x32xbf16>
    %cst_30 = arith.constant dense<0.000000e+00> : vector<16x32xf32>
    %101 = tpu.matmul %99, %100, %cst_30 {dimension_numbers = #tpu.dot_dimension_numbers<[1], [0], [0], [1], [0, 0, 1, 1], [], []>} : vector<16x128xbf16>, vector<128x32xbf16>, vector<16x32xf32> -> vector<16x32xf32>
    %cst_31 = arith.constant 5.000000e-01 : f32
    %102 = vector.broadcast %cst_31 : f32 to vector<16x32xf32>
    %103 = arith.mulf %101, %102 : vector<16x32xf32>
    %c0_32 = arith.constant 0 : index
    %c0_33 = arith.constant 0 : index
    %104 = vector.load %arg7[%c0_32, %c0_33] : memref<16x32xf32, #tpu.memory_space<vmem>>, vector<16x32xf32>
    tpu.vector_store %arg7[%c0_32, %c0_33], %103 {strides = array<i32>} : memref<16x32xf32, #tpu.memory_space<vmem>>, vector<16x32xf32>,
    return
  }
  func.func @transform_0(%arg0: i32) -> (i32, i32) {
    %c0_i32 = arith.constant 0 : i32
    %c0_i32_0 = arith.constant 0 : i32
    return %arg0, %c0_i32 : i32, i32
  }
  func.func @transform_1(%arg0: i32) -> (i32, i32) {
    %c0_i32 = arith.constant 0 : i32
    %c0_i32_0 = arith.constant 0 : i32
    return %arg0, %c0_i32 : i32, i32
  }
  func.func @transform_2(%arg0: i32) -> (i32, i32) {
    %c0_i32 = arith.constant 0 : i32
    %c0_i32_0 = arith.constant 0 : i32
    %c0_i32_1 = arith.constant 0 : i32
    return %c0_i32, %c0_i32_0 : i32, i32
  }
  func.func @transform_3(%arg0: i32) -> (i32, i32) {
    %c0_i32 = arith.constant 0 : i32
    %c0_i32_0 = arith.constant 0 : i32
    %c0_i32_1 = arith.constant 0 : i32
    return %c0_i32, %c0_i32_0 : i32, i32
  }
  func.func @transform_4(%arg0: i32) -> (i32, i32) {
    %c0_i32 = arith.constant 0 : i32
    %c0_i32_0 = arith.constant 0 : i32
    %c0_i32_1 = arith.constant 0 : i32
    return %c0_i32, %c0_i32_0 : i32, i32
  }
  func.func @transform_5(%arg0: i32) -> (i32, i32) {
    %c0_i32 = arith.constant 0 : i32
    %c0_i32_0 = arith.constant 0 : i32
    %c0_i32_1 = arith.constant 0 : i32
    return %c0_i32, %c0_i32_0 : i32, i32
  }
  func.func @transform_6(%arg0: i32) -> (i32, i32) {
    %c0_i32 = arith.constant 0 : i32
    %c0_i32_0 = arith.constant 0 : i32
    return %arg0, %c0_i32 : i32, i32
  }
}

</mosaic_0001>

<bundles_post_ra>
// kernel: tpu_custom_call.1
= control target key start
LH: loop header
LB: loop body
LE: loop exit
PB: predicated region body
PF: predicated region fallthrough
CT: control target
= control target key end

     0   :  { %11 = vsyncpa [#allocation3], 0  ;;  %s1114_s0 = inlined_call_operand.vmem [shape: bf16[16,32], index: 0, kind: input, shape index: {}]   ;;  %s1115_s1 = inlined_call_operand.vmem [shape: f32[16,8], index: 1, kind: input, shape index: {}]   ;;  %s1116_s2 = inlined_call_operand.vmem [shape: bf16[32,128], index: 2, kind: input, shape index: {}]   ;;  %s1117_s3 = inlined_call_operand.vmem [shape: bf16[128,32], index: 3, kind: input, shape index: {}]   ;;  %s1118_s4 = inlined_call_operand.vmem [shape: bf16[128,128], index: 4, kind: input, shape index: {}]   ;;  %s1119_s5 = inlined_call_operand.hbm [shape: bf16[128,128], index: 5, kind: input, shape index: {}]   ;;  %s1120_s6 = inlined_call_operand.hbm [shape: f32[16,32], index: 6, kind: output, shape index: {}]  }
   0x1   :  { %12 = vsyncpa [#allocation4], 0  ;;  %s889_s21 = smov [#allocation2]  }
   0x2   :  { %s28_s22 = sshll.u32 %s889_s21, 4  ;;  %s29_s22 = int_to_ptr.vmem [resolvable:$true] %s28_s22 }
   0x3   :  { %s853_s23 = scalar_lea.vmem %s29_s22, 1024  ;;  %p858_p1 = scmp.lt.s32.totalorder %s29_s22, %s29_s22 }
   0x4   :  { %p854_p0 = scmp.ne.s32.totalorder %s29_s22, %s853_s23  ;;  %p859_p2 = scmp.lt.s32.totalorder %s853_s23, %s853_s23 }
   0x6   :  { %p860_p3 = por %p859_p2, %p858_p1 }
   0x8   :  { %p861_p4 = pnand %p860_p3, %p854_p0 }
   0xa   :  { %864 = shalt.err (!%p861_p4)
}
   0xb   :  { %s890_s24 = smov 64   ;;  %s891_s25 = smov 4  }
   0xc   :  { %34 = dma.hbm_to_vmem [thread:$0]  %s1119_s5, 1024, %s29_s22, [#allocation3], %s890_s24, %s890_s24, %s891_s25  }
   0xd   :  { %885 = dma.done.wait [#allocation3], 1024  }
   0xe   :  { %886 = vsyncadd [#allocation3], 4294966272  ;;  %v892_v0 = vmov 0.0   ;;  %vm893_vm0 = vmmov 0   ;;  %v802_v1 = vld [vmem:[%s1116_s2 + $0x8] sm:$0xff]   ;;  %v803_v2 = vld [vmem:[%s1116_s2] sm:$0xff]   ;;  %v215_v23 = vlaneseq }
   0xf   :  { %703 = vmatprep.subr.bf16.mxu0 %v892_v0  ;;  %707 = vmatprep.mubr.msk.bf16.mxu0 %vm893_vm0, %v892_v0  ;;  %v805_v3 = vld [vmem:[#allocation2 + $0x38] sm:$0xff]   ;;  %v804_v4 = vld [vmem:[%s1114_s0] sm:$0xff]   ;;  %v806_v5 = vld [vmem:[#allocation2 + $0x30] sm:$0xff]   ;;  %vm64_vm1 = vcmask 261120   ;;  %v894_v13 = vmov 1   ;;  %v895_v14 = vmov 0  }
  0x10   :  { %711 = vmatprep.subr.bf16.mxu1 %v892_v0  ;;  %727 = vmatprep.mubr.msk.bf16.mxu1 %vm893_vm0, %v892_v0  ;;  %v807_v6 = vld [vmem:[#allocation2 + $0x28] sm:$0xff]   ;;  %v808_v7 = vld [vmem:[#allocation2 + $0x20] sm:$0xff]   ;;  %v809_v8 = vld [vmem:[#allocation2 + $0x18] sm:$0xff]   ;;  %v896_v16 = vmov 2   ;;  %v897_v17 = vmov 3   ;;  %v216_v25 = vand.u32 127, %v215_v23 }
  0x11   :  { %704 = vmatpush3.bf16.msra.mxu0 %v802_v1  ;;  %712 = vmatpush3.bf16.msra.mxu1 %v805_v3  ;;  %v810_v9 = vld [vmem:[#allocation2 + $0x10] sm:$0xff]   ;;  %v811_v10 = vld [vmem:[#allocation2 + $0x8] sm:$0xff]   ;;  %v812_v11 = vld [vmem:[#allocation2] sm:$0xff]   ;;  %v898_v54 = vmov 4   ;;  %s902_s13 = smov [#allocation5]  }
  0x12   :  { %705 = vmatprep.subr.bf16.mxu0 %v892_v0  ;;  %713 = vmatprep.subr.bf16.mxu1 %v892_v0  ;;  %v974_v12 = vld [vmem:[%s1115_s1] sm:$0xff]  ;;  %v981_v15 = vld [vmem:[%s1115_s1 + $0x8] sm:$0xff]  ;;  %v217_v27 = vcvt.s32.f32 %v216_v25  ;;  %s625_s14 = sshll.u32 %s902_s13, 4  ;;  %s626_s14 = int_to_ptr.vmem [resolvable:$true] %s625_s14 }
  0x13   :  { %788 = vset.pattern.permute.xlu1 %v894_v13  ;;  %787 = vset.pattern.permute.xlu0 %v895_v14  ;;  %p870_p6 = scmp.lt.s32.totalorder %s626_s14, %s626_s14 }
  0x14   :  { %267 = vperm.xlu1 %788, %v974_v12   ;;  %220 = vperm.xlu0 %787, %v974_v12  }
  0x15   :  { %706 = vmatpush3.bf16.msra.mxu0 %v803_v2  ;;  %714 = vmatpush3.bf16.msra.mxu1 %v806_v5 }
  0x16   :  { %731 = vmatprep.subr.bf16.mxu0 %v892_v0  ;;  %715 = vmatprep.subr.bf16.mxu1 %v892_v0 }
  0x18   :  { %708 = vmatmul.mubr.msk.bf16.vlgmr.msra.gmra.mxu0 %vm64_vm1, %v804_v4  ;;  %271 = vperm.xlu1 %788, %v981_v15  }
  0x19   :  { %747 = vmatprep.mubr.msk.bf16.mxu0 %vm893_vm0, %v892_v0  ;;  %716 = vmatpush3.bf16.msra.mxu1 %v807_v6 }
  0x1a   :  { %717 = vmatprep.subr.bf16.mxu1 %v892_v0  ;;  %225 = vperm.xlu0 %787, %v981_v15  }
  0x1c   :  { %790 = vset.pattern.permute.xlu1 %v896_v16 }
  0x1d   :  { %718 = vmatpush3.bf16.msra.mxu1 %v808_v7  ;;  %317 = vperm.xlu1 %790, %v981_v15  }
  0x1e   :  { %719 = vmatprep.subr.bf16.mxu1 %v892_v0  ;;  %789 = vset.pattern.permute.xlu0 %v896_v16 }
  0x1f   :  { %313 = vperm.xlu0 %789, %v974_v12  }
  0x21   :  { %720 = vmatpush3.bf16.msra.mxu1 %v809_v8  ;;  %791 = vset.pattern.permute.xlu1 %v897_v17 }
  0x22   :  { %721 = vmatprep.subr.bf16.mxu1 %v892_v0  ;;  %359 = vperm.xlu1 %791, %v974_v12  }
  0x23   :  { %792 = vset.pattern.permute.xlu0 %v897_v17 }
  0x24   :  { %363 = vperm.xlu0 %792, %v981_v15  }
  0x25   :  { %722 = vmatpush3.bf16.msra.mxu1 %v810_v9 }
  0x26   :  { %723 = vmatprep.subr.bf16.mxu1 %v892_v0  ;;  %793 = vset.pattern.permute.xlu1 %v898_v54 }
  0x28   :  { %794 = vset.pattern.permute.xlu0 %v898_v54 }
  0x29   :  { %724 = vmatpush3.bf16.msra.mxu1 %v811_v10 }
  0x2a   :  { %725 = vmatprep.subr.bf16.mxu1 %v892_v0 }
  0x2d   :  { %726 = vmatpush3.bf16.msra.mxu1 %v812_v11 }
  0x2e   :  { %751 = vmatprep.subr.bf16.mxu1 %v892_v0 }
  0x8f   :  { %v268_v24 = vpop.permute.xlu1 %267  ;;  %v221_v26 = vpop.permute.xlu0 %220 }
  0x90   :  { %vm228_vm2 = vcmp.eq.f32.partialorder %v221_v26, %v217_v27  ;;  %vm274_vm3 = vcmp.eq.f32.partialorder %v268_v24, %v217_v27 }
  0x91   :  { %v992_v30 = vsel %vm228_vm2, 1.0, %v892_v0  ;;  %v996_v35 = vsel %vm274_vm3, 1.0, %v892_v0 }
  0x93   :  { %v272_v28 = vpop.permute.xlu1 %271 }
  0x94   :  { %vm275_vm6 = vcmp.eq.f32.partialorder %v272_v28, %v217_v27 }
  0x95   :  { %v226_v29 = vpop.permute.xlu0 %225  ;;  %v1007_v44 = vsel %vm275_vm6, 1.0, %v892_v0 }
  0x96   :  { %vm229_vm4 = vcmp.eq.f32.partialorder %v226_v29, %v217_v27  ;;  %v814_v29 = vld [vmem:[%s1118_s4 + $0x30] sm:$0xff]  }
  0x97   :  { %v999_v37 = vsel %vm229_vm4, 1.0, %v892_v0 }
  0x98   :  { %v318_v31 = vpop.permute.xlu1 %317 }
  0x99   :  { %vm321_vm7 = vcmp.eq.f32.partialorder %v318_v31, %v217_v27 }
  0x9a   :  { %v314_v32 = vpop.permute.xlu0 %313  ;;  %v1012_v48 = vsel %vm321_vm7, 1.0, %v892_v0 }
  0x9b   :  { %vm320_vm5 = vcmp.eq.f32.partialorder %v314_v32, %v217_v27  ;;  %v899_v32 = vmov 5  }
  0x9c   :  { %v1004_v42 = vsel %vm320_vm5, 1.0, %v892_v0 }
  0x9d   :  { %v360_v38 = vpop.permute.xlu1 %359 }
  0x9e   :  { %vm366_vm8 = vcmp.eq.f32.partialorder %v360_v38, %v217_v27 }
  0x9f   :  { %v364_v45 = vpop.permute.xlu0 %363  ;;  %v1015_v49 = vsel %vm366_vm8, 1.0, %v892_v0 }
  0xa0   :  { %vm367_vm9 = vcmp.eq.f32.partialorder %v364_v45, %v217_v27  ;;  %v901_v45 = vmov 7  }
  0xa1   :  { %v1020_v52 = vsel %vm367_vm9, 1.0, %v892_v0 }
  0xd8   :  { %v102_v18 = vpop.f32.mrf.mxu0 }
  0xda   :  { %v709_v19 = vpop.f32.mrf.mxu0 }
  0xdc   :  { %v105_v20 = vpop.f32.mrf.mxu0 }
  0xdd   :  { %v109_v21 = vpack.c.bf16 %v105_v20, %v102_v18 }
  0xde   :  { %v710_v22 = vpop.f32.mrf.mxu0 }
  0xdf   :  { %728 = vmatmul.mubr.bf16.vlgmr.msra.gmra.mxu1 %v109_v21  ;;  %v813_v22 = vld [vmem:[%s1118_s4 + $0x38] sm:$0xff]  }
  0xe0   :  { %767 = vmatprep.mubr.msk.bf16.mxu1 %vm893_vm0, %v892_v0  ;;  %732 = vmatpush3.bf16.msra.mxu0 %v813_v22 }
  0xe1   :  { %733 = vmatprep.subr.bf16.mxu0 %v892_v0 }
  0xe4   :  { %734 = vmatpush3.bf16.msra.mxu0 %v814_v29 }
  0xe5   :  { %735 = vmatprep.subr.bf16.mxu0 %v892_v0 }
 0x19f   :  { %v208_v33 = vpop.f32.mrf.mxu1 }
 0x1a0   :  { %v234_v34 = vmul.f32 %v992_v30, %v208_v33  ;;  %v280_v40 = vmul.f32 %v996_v35, %v208_v33  ;;  %v326_v46 = vmul.f32 %v1004_v42, %v208_v33  ;;  %v372_v50 = vmul.f32 %v1015_v49, %v208_v33 }
 0x1a1   :  { %v729_v36 = vpop.f32.mrf.mxu1 }
 0x1a2   :  { %236 = vadd.xlane.f32.xlu1 %v234_v34 }
 0x1a3   :  { %v211_v39 = vpop.f32.mrf.mxu1 }
 0x1a4   :  { %v235_v41 = vmul.f32 %v999_v37, %v211_v39  ;;  %v281_v47 = vmul.f32 %v1007_v44, %v211_v39  ;;  %v327_v51 = vmul.f32 %v1012_v48, %v211_v39  ;;  %v373_v53 = vmul.f32 %v1020_v52, %v211_v39 }
 0x1a5   :  { %v730_v43 = vpop.f32.mrf.mxu1 }
 0x1a6   :  { %282 = vadd.xlane.f32.xlu1 %v280_v40  ;;  %238 = vadd.xlane.f32.xlu0 %v235_v41  ;;  %v815_v40 = vld [vmem:[%s1118_s4 + $0x28] sm:$0xff]   ;;  %v900_v43 = vmov 6  }
 0x1a7   :  { %736 = vmatpush3.bf16.msra.mxu0 %v815_v40 }
 0x1a8   :  { %737 = vmatprep.subr.bf16.mxu0 %v892_v0 }
 0x1aa   :  { %328 = vadd.xlane.f32.xlu1 %v326_v46  ;;  %284 = vadd.xlane.f32.xlu0 %v281_v47 }
 0x1ae   :  { %374 = vadd.xlane.f32.xlu1 %v372_v50  ;;  %330 = vadd.xlane.f32.xlu0 %v327_v51  ;;  %v816_v51 = vld [vmem:[%s1118_s4 + $0x20] sm:$0xff]  }
 0x1af   :  { %738 = vmatpush3.bf16.msra.mxu0 %v816_v51 }
 0x1b0   :  { %739 = vmatprep.subr.bf16.mxu0 %v892_v0 }
 0x1b2   :  { %376 = vadd.xlane.f32.xlu0 %v373_v53 }
 0x22b   :  { %v237_v55 = vpop.xlane.xlu1 %236 }
 0x22c   :  { %v242_v56 = vmul.f32 0.70710677, %v237_v55  ;;  %v240_v6 = vmul.f32 0.5, %v237_v55 }
 0x22e   :  { %829 = verf.f32 %v242_v56  ;;  %v817_v56 = vld [vmem:[%s1118_s4 + $0x18] sm:$0xff]  }
 0x22f   :  { %v283_v57 = vpop.xlane.xlu1 %282  ;;  %v239_v58 = vpop.xlane.xlu0 %238  ;;  %740 = vmatpush3.bf16.msra.mxu0 %v817_v56 }
 0x230   :  { %v288_v59 = vmul.f32 0.70710677, %v283_v57  ;;  %v243_v60 = vmul.f32 0.70710677, %v239_v58  ;;  %v286_v14 = vmul.f32 0.5, %v283_v57  ;;  %v241_v18 = vmul.f32 0.5, %v239_v58  ;;  %741 = vmatprep.subr.bf16.mxu0 %v892_v0 }
 0x232   :  { %831 = verf.f32 %v288_v59 }
 0x233   :  { %833 = verf.f32 %v243_v60  ;;  %v329_v61 = vpop.xlane.xlu1 %328  ;;  %v285_v62 = vpop.xlane.xlu0 %284 }
 0x234   :  { %v334_v63 = vmul.f32 0.70710677, %v329_v61  ;;  %v289_v2 = vmul.f32 0.70710677, %v285_v62  ;;  %v332_v25 = vmul.f32 0.5, %v329_v61  ;;  %v287_v50 = vmul.f32 0.5, %v285_v62 }
 0x235   :  { %v818_v61 = vld [vmem:[%s1118_s4 + $0x10] sm:$0xff]  }
 0x236   :  { %835 = verf.f32 %v334_v63  ;;  %742 = vmatpush3.bf16.msra.mxu0 %v818_v61 }
 0x237   :  { %v375_v1 = vpop.xlane.xlu1 %374  ;;  %v1023_v4 = vpop.xlane.xlu0 %330  ;;  %743 = vmatprep.subr.bf16.mxu0 %v892_v0 }
 0x238   :  { %v380_v3 = vmul.f32 0.70710677, %v375_v1  ;;  %v335_v8 = vmul.f32 0.70710677, %v1023_v4  ;;  %v378_v38 = vmul.f32 0.5, %v375_v1  ;;  %v333_v58 = vmul.f32 0.5, %v1023_v4 }
 0x239   :  { %v819_v1 = vld [vmem:[%s1118_s4 + $0x8] sm:$0xff]   ;;  %v820_v4 = vld [vmem:[%s1118_s4] sm:$0xff]  }
 0x23a   :  { %837 = verf.f32 %v380_v3  ;;  %744 = vmatpush3.bf16.msra.mxu0 %v819_v1 }
 0x23b   :  { %v830_v5 = vpop.eup %829  ;;  %839 = verf.f32 %v289_v2  ;;  %v1026_v11 = vpop.xlane.xlu0 %376  ;;  %745 = vmatprep.subr.bf16.mxu0 %v892_v0 }
 0x23c   :  { %v246_v7 = vadd.f32 1.0, %v830_v5  ;;  %841 = verf.f32 %v335_v8  ;;  %v381_v21 = vmul.f32 0.70710677, %v1026_v11  ;;  %v379_v62 = vmul.f32 0.5, %v1026_v11  ;;  %v821_v5 = vld [vmem:[%s1117_s3 + $0x38] sm:$0xff]  }
 0x23d   :  { %752 = vmatpush3.bf16.msra.mxu1 %v821_v5  ;;  %v825_v8 = vld [vmem:[%s1117_s3 + $0x18] sm:$0xff]  }
 0x23e   :  { %v248_v9 = vmul.f32 %v246_v7, %v240_v6  ;;  %843 = verf.f32 %v381_v21  ;;  %746 = vmatpush3.bf16.msra.mxu0 %v820_v4  ;;  %v822_v6 = vld [vmem:[%s1117_s3 + $0x30] sm:$0xff]   ;;  %753 = vmatprep.subr.bf16.mxu1 %v892_v0  ;;  %v824_v7 = vld [vmem:[%s1117_s3 + $0x20] sm:$0xff]  }
 0x23f   :  { %v832_v10 = vpop.eup %831 }
 0x240   :  { %v834_v13 = vpop.eup %833  ;;  %v292_v16 = vadd.f32 1.0, %v832_v10  ;;  %v250_v17 = vmul.f32 %v248_v9, %v974_v12  ;;  %v826_v9 = vld [vmem:[%s1117_s3 + $0x10] sm:$0xff]  }
 0x241   :  { %v247_v19 = vadd.f32 1.0, %v834_v13  ;;  %754 = vmatpush3.bf16.msra.mxu1 %v822_v6 }
 0x242   :  { %v294_v20 = vmul.f32 %v292_v16, %v286_v14  ;;  %254 = vperm.xlu1 %793, %v250_v17   ;;  %755 = vmatprep.subr.bf16.mxu1 %v892_v0 }
 0x243   :  { %v836_v23 = vpop.eup %835  ;;  %v249_v24 = vmul.f32 %v247_v19, %v241_v18 }
 0x244   :  { %v338_v26 = vadd.f32 1.0, %v836_v23  ;;  %v296_v27 = vmul.f32 %v294_v20, %v974_v12 }
 0x245   :  { %v251_v28 = vmul.f32 %v249_v24, %v981_v15 }
 0x246   :  { %v340_v31 = vmul.f32 %v338_v26, %v332_v25  ;;  %795 = vset.pattern.permute.xlu1 %v899_v32 }
 0x247   :  { %v838_v33 = vpop.eup %837  ;;  %259 = vperm.xlu0 %794, %v251_v28   ;;  %300 = vperm.xlu1 %795, %v296_v27  }
 0x248   :  { %v384_v34 = vadd.f32 1.0, %v838_v33  ;;  %v840_v36 = vpop.eup %839  ;;  %v342_v39 = vmul.f32 %v340_v31, %v974_v12 }
 0x249   :  { %v293_v46 = vadd.f32 1.0, %v840_v36  ;;  %v842_v47 = vpop.eup %841 }
 0x24a   :  { %v386_v41 = vmul.f32 %v384_v34, %v378_v38  ;;  %v339_v55 = vadd.f32 1.0, %v842_v47 }
 0x24b   :  { %796 = vset.pattern.permute.xlu1 %v900_v43  ;;  %801 = vset.pattern.permute.xlu0 %v901_v45  ;;  %v295_v54 = vmul.f32 %v293_v46, %v287_v50  ;;  %v844_v57 = vpop.eup %843 }
 0x24c   :  { %346 = vperm.xlu1 %796, %v342_v39   ;;  %v388_v53 = vmul.f32 %v386_v41, %v974_v12  ;;  %v341_v60 = vmul.f32 %v339_v55, %v333_v58  ;;  %v385_v12 = vadd.f32 1.0, %v844_v57 }
 0x24d   :  { %v297_v59 = vmul.f32 %v295_v54, %v981_v15 }
 0x24e   :  { %v343_v63 = vmul.f32 %v341_v60, %v981_v15  ;;  %v387_v2 = vmul.f32 %v385_v12, %v379_v62 }
 0x250   :  { %797 = vset.pattern.permute.xlu1 %v901_v45  ;;  %v389_v3 = vmul.f32 %v387_v2, %v981_v15  ;;  %v823_v15 = vld [vmem:[%s1117_s3 + $0x28] sm:$0xff]  }
 0x251   :  { %392 = vperm.xlu1 %797, %v388_v53   ;;  %756 = vmatpush3.bf16.msra.mxu1 %v823_v15 }
 0x252   :  { %757 = vmatprep.subr.bf16.mxu1 %v892_v0 }
 0x255   :  { %798 = vset.pattern.permute.xlu1 %v899_v32  ;;  %758 = vmatpush3.bf16.msra.mxu1 %v824_v7 }
 0x256   :  { %305 = vperm.xlu1 %798, %v297_v59   ;;  %759 = vmatprep.subr.bf16.mxu1 %v892_v0 }
 0x259   :  { %760 = vmatpush3.bf16.msra.mxu1 %v825_v8 }
 0x25a   :  { %799 = vset.pattern.permute.xlu1 %v900_v43  ;;  %761 = vmatprep.subr.bf16.mxu1 %v892_v0 }
 0x25b   :  { %351 = vperm.xlu1 %799, %v343_v63  }
 0x25d   :  { %762 = vmatpush3.bf16.msra.mxu1 %v826_v9 }
 0x25e   :  { %763 = vmatprep.subr.bf16.mxu1 %v892_v0 }
 0x25f   :  { %800 = vset.pattern.permute.xlu1 %v901_v45 }
 0x260   :  { %397 = vperm.xlu1 %800, %v389_v3  }
 0x2bd   :  { %v255_v10 = vpop.permute.xlu1 %254 }
 0x2be   :  { %v262_v21 = vmul.f32 %v992_v30, %v255_v10  ;;  %v827_v30 = vld [vmem:[%s1117_s3 + $0x8] sm:$0xff]  }
 0x2bf   :  { %764 = vmatpush3.bf16.msra.mxu1 %v827_v30 }
 0x2c0   :  { %765 = vmatprep.subr.bf16.mxu1 %v892_v0 }
 0x2c2   :  { %v301_v11 = vpop.permute.xlu1 %300  ;;  %v260_v17 = vpop.permute.xlu0 %259 }
 0x2c3   :  { %v308_v18 = vmul.f32 %v996_v35, %v301_v11  ;;  %v263_v22 = vmul.f32 %v999_v37, %v260_v17  ;;  %v828_v37 = vld [vmem:[%s1117_s3] sm:$0xff]   ;;  %s865_s3 = scalar_lea.vmem %s626_s14, 256 }
 0x2c4   :  { %766 = vmatpush3.bf16.msra.mxu1 %v828_v37  ;;  %p866_p5 = scmp.ne.s32.totalorder %s626_s14, %s865_s3  ;;  %p871_p7 = scmp.lt.s32.totalorder %s865_s3, %s865_s3 }
 0x2c5   :  { %v310_v25 = vadd.f32 %v308_v18, %v262_v21 }
 0x2c6   :  { %p872_p8 = por %p871_p7, %p870_p6 }
 0x2c7   :  { %v347_v13 = vpop.permute.xlu1 %346 }
 0x2c8   :  { %v354_v23 = vmul.f32 %v1004_v42, %v347_v13  ;;  %p873_p9 = pnand %p872_p8, %p866_p5 }
 0x2ca   :  { %v356_v29 = vadd.f32 %v354_v23, %v310_v25 }
 0x2cc   :  { %v393_v14 = vpop.permute.xlu1 %392 }
 0x2cd   :  { %v400_v26 = vmul.f32 %v1015_v49, %v393_v14 }
 0x2cf   :  { %v402_v32 = vadd.f32 %v400_v26, %v356_v29 }
 0x2d1   :  { %v306_v16 = vpop.permute.xlu1 %305 }
 0x2d2   :  { %v309_v19 = vmul.f32 %v1007_v44, %v306_v16 }
 0x2d4   :  { %v311_v27 = vadd.f32 %v309_v19, %v263_v22 }
 0x2d6   :  { %v352_v20 = vpop.permute.xlu1 %351 }
 0x2d7   :  { %v355_v24 = vmul.f32 %v1012_v48, %v352_v20 }
 0x2d9   :  { %v357_v31 = vadd.f32 %v355_v24, %v311_v27 }
 0x2db   :  { %v398_v28 = vpop.permute.xlu1 %397 }
 0x2dc   :  { %v401_v35 = vmul.f32 %v1020_v52, %v398_v28 }
 0x2de   :  { %v403_v44 = vadd.f32 %v401_v35, %v357_v31 }
 0x2e0   :  { %v404_v33 = vpack.c.bf16 %v403_v44, %v402_v32 }
 0x2e2   :  { %748 = vmatmul.mubr.bf16.vlgmr.msra.gmra.mxu0 %v404_v33 }
 0x3a2   :  { %v503_v42 = vpop.f32.mrf.mxu0 }
 0x3a4   :  { %v749_v48 = vpop.f32.mrf.mxu0 }
 0x3a6   :  { %v506_v49 = vpop.f32.mrf.mxu0 }
 0x3a7   :  { %v510_v52 = vpack.c.bf16 %v506_v49, %v503_v42 }
 0x3a8   :  { %v750_v34 = vpop.f32.mrf.mxu0 }
 0x3a9   :  { %768 = vmatmul.mubr.bf16.vlgmr.msra.gmra.mxu1 %v510_v52 }
 0x469   :  { %v609_v36 = vpop.f32.mrf.mxu1 }
 0x46a   :  { %v616_v38 = vmul.f32 0.5, %v609_v36 }
 0x46b   :  { %v769_v39 = vpop.f32.mrf.mxu1 }
 0x46c   :  { %618 = vst.msk [vmem:[#allocation5] sm:$0xff] %vm64_vm1, %v616_v38 }
 0x46d   :  { %v612_v40 = vpop.f32.mrf.mxu1 }
 0x46e   :  { %v617_v0 = vmul.f32 0.5, %v612_v40 }
 0x46f   :  { %v770_v41 = vpop.f32.mrf.mxu1 }
 0x470   :  { %619 = vst.msk [vmem:[#allocation5 + $0x8] sm:$0xff] %vm64_vm1, %v617_v0 }
 0x471   :  { %876 = shalt.err (!%p873_p9)
}
 0x472   :  { %s903_s15 = smov 128   ;;  %s904_s16 = smov 8  }
 0x473   :  { %631 = dma.vmem_to_hbm [thread:$0]  %s626_s14, 256, %s1120_s6, [#allocation4], %s903_s15, %s903_s15, %s904_s16  }
 0x474   :  { %887 = dma.done.wait [#allocation4], 256  }
 0x475   :  { %888 = vsyncadd [#allocation4], 4294967040 }
 0x476   :  { %635 = vsyncpa [#allocation3], 1 }
 0x477   :  { %636 = vsyncpa [#allocation4], 1 }

</bundles_post_ra>
